<compile_context>
chip_gen: v5e
topology: v5e:2x2
jax: 0.10.0
libtpu: 0.0.40
codegen_flags: <defaults>
</compile_context>

<pallas_src>
import functools

import jax
import jax.numpy as jnp
import numpy as np
from jax import lax
from jax.experimental import pallas as pl
from jax.experimental.pallas import tpu as pltpu


# -----------------------------------------------------------------------------
# Pallas kernel: branch2 for one (batch, H-strip) tile.
#   window = tH + 2 rows (1-row halo top/bottom), channels lane-padded to Cp.
# -----------------------------------------------------------------------------
def _branch2_kernel(xm_ref, xa_ref, xb_ref, w1_ref, wd_ref, w2_ref, y_ref):
    tH = y_ref.shape[1]

    # Assemble the (tH + 2)-row halo window (leading-dim concat: cheap).
    win = jnp.concatenate([xm_ref[0], xa_ref[0], xb_ref[0]], axis=0)
    Hw, Wd, Cp = win.shape

    # 1x1 conv on MXU (BN1 scale folded into w1; bias rides the ones channel),
    # then ReLU.  Zero halo rows stay exactly zero.
    t = jnp.dot(win.reshape(Hw * Wd, Cp), w1_ref[...],
                preferred_element_type=jnp.float32)
    t = jnp.maximum(t, 0.0).reshape(Hw, Wd, Cp)

    # Depthwise 3x3, stride 1, pad 1 (BN2 scale folded into the taps; BN2 bias
    # folded into the final matmul bias).  H taps: leading-dim slices of the
    # halo window.  W taps: two explicit zero-filled +-1 shifts.
    zcol = jnp.zeros((Hw, 1, Cp), jnp.float32)
    t_wm = jnp.concatenate([zcol, t[:, :-1, :]], axis=1)   # t[h, w-1, c]
    t_wp = jnp.concatenate([t[:, 1:, :], zcol], axis=1)    # t[h, w+1, c]

    acc = jnp.zeros((tH, Wd, Cp), jnp.float32)
    for dj, tj in ((-1, t_wm), (0, t), (1, t_wp)):
        for di in (-1, 0, 1):
            tap = (di + 1) * 3 + (dj + 1)
            acc = acc + tj[1 + di:1 + di + tH] * wd_ref[tap]

    # 1x1 conv on MXU (BN3 scale folded into w2; b2@w2 + b3 bias rides the
    # ones channel), then ReLU.  Lane-dense full-block store.
    y = jnp.dot(acc.reshape(tH * Wd, Cp), w2_ref[...],
                preferred_element_type=jnp.float32)
    y_ref[0] = jnp.maximum(y, 0.0).reshape(tH, Wd, Cp)


# -----------------------------------------------------------------------------
# Wrapper (NCHW in / NCHW out, like the PyTorch module).
# -----------------------------------------------------------------------------
def _fold_bn(gamma, beta, mean, var, eps=1e-5):
    scale = gamma / jnp.sqrt(var + eps)
    return scale, beta - mean * scale


def _round_up(x, m):
    return (x + m - 1) // m * m


def _pick_tile_h(H, target=8):
    """Largest divisor of H that is <= target (keeps halo math exact)."""
    best = 1
    for d in range(1, H + 1):
        if H % d == 0 and d <= target:
            best = d
    return best


@jax.jit
def inverted_residual_stride1(x_nchw, params):
    N, C, H, W = x_nchw.shape
    assert C % 2 == 0
    bf = C // 2
    Cp = _round_up(bf + 1, 128)          # branch channels + ones channel, lane-padded
    tH = _pick_tile_h(H)
    nH = H // tH
    f32 = jnp.float32

    # Fold eval-mode BatchNorm into the conv weights / biases.
    s1, b1 = _fold_bn(*params["bn1"])
    s2, b2 = _fold_bn(*params["bn2"])
    s3, b3 = _fold_bn(*params["bn3"])

    w1 = params["w1_t"][:, :, 0, 0].astype(f32)            # (out, in)
    w2 = params["w2_t"][:, :, 0, 0].astype(f32)            # (out, in)
    wd = params["wd_t"][:, 0].reshape(bf, 9).astype(f32)   # (c, 9) taps row-major

    w1f = (w1 * s1[:, None]).T                             # (in, out), BN1 scale folded
    w2f = (w2 * s3[:, None]).T                             # (in, out), BN3 scale folded
    wdf = (wd * s2[:, None]).T                             # (9, c),   BN2 scale folded
    b_last = b3 + b2 @ w2f                                 # BN2 bias folded forward

    # Homogeneous-coordinate augmentation: channel `bf` is a constant-one
    # channel that carries b1 / b_last through the MXU matmuls.
    w1p = (jnp.zeros((Cp, Cp), f32)
           .at[:bf, :bf].set(w1f)
           .at[bf, :bf].set(b1)
           .at[bf, bf].set(1.0))                           # keep the ones channel alive
    wdp = (jnp.zeros((9, Cp), f32)
           .at[:, :bf].set(wdf)
           .at[4, bf].set(1.0))                            # center tap passes the ones
    w2p = (jnp.zeros((Cp, Cp), f32)
           .at[:bf, :bf].set(w2f)
           .at[bf, :bf].set(b_last))

    # x2 (second channel half) in NHWC, + ones channel, lane-pad to Cp,
    # 1-row zero halo along H (so halo rows contribute exact zeros).
    x2 = jnp.transpose(x_nchw[:, bf:].astype(f32), (0, 2, 3, 1))   # (N, H, W, bf)
    ones = jnp.ones((N, H, W, 1), f32)
    x2p = jnp.concatenate([x2, ones], axis=-1)
    x2p = jnp.pad(x2p, ((0, 0), (1, 1), (0, 0), (0, Cp - bf - 1)))  # (N, H+2, W, Cp)

    y_p = pl.pallas_call(
        _branch2_kernel,
        out_shape=jax.ShapeDtypeStruct((N, H, W, Cp), f32),
        grid_spec=pltpu.PrefetchScalarGridSpec(
            num_scalar_prefetch=0,
            grid=(N, nH),
            in_specs=[
                # main tH-row strip of the H-padded input
                pl.BlockSpec((1, tH, W, Cp), lambda n, i: (n, i, 0, 0)),
                # two single-row tail views supplying the bottom halo
                pl.BlockSpec((1, 1, W, Cp), lambda n, i: (n, i * tH + tH, 0, 0)),
                pl.BlockSpec((1, 1, W, Cp), lambda n, i: (n, i * tH + tH + 1, 0, 0)),
                # folded weights (resident in VMEM across grid steps)
                pl.BlockSpec((Cp, Cp), lambda n, i: (0, 0)),   # w1 (+bias row)
                pl.BlockSpec((9, Cp), lambda n, i: (0, 0)),    # depthwise taps
                pl.BlockSpec((Cp, Cp), lambda n, i: (0, 0)),   # w2 (+bias row)
            ],
            out_specs=pl.BlockSpec((1, tH, W, Cp), lambda n, i: (n, i, 0, 0)),
        ),
        compiler_params=pltpu.CompilerParams(
            dimension_semantics=("parallel", "parallel")),
    )(x2p, x2p, x2p, w1p, wdp, w2p)

    # Fused channel_shuffle(groups=2) + NHWC->NCHW:
    #   out[:, 2k] = x1[:, k], out[:, 2k+1] = branch2[:, k]
    y = jnp.transpose(y_p[..., :bf], (0, 3, 1, 2))          # (N, bf, H, W)
    x1 = x_nchw[:, :bf]
    return jnp.stack([x1, y], axis=2).reshape(N, C, H, W)


# -----------------------------------------------------------------------------
# Pure-JAX reference (mirrors the PyTorch forward, eval-mode BN), NCHW.
# -----------------------------------------------------------------------------
def reference(x, params):
    N, C, H, W = x.shape
    bf = C // 2
    dn = ("NCHW", "OIHW", "NCHW")

    def bn(z, gbmv, eps=1e-5):
        g, b, m, v = gbmv
        s = g / jnp.sqrt(v + eps)
        return z * s[None, :, None, None] + (b - m * s)[None, :, None, None]

    x1, x2 = x[:, :bf], x[:, bf:]

    t = lax.conv_general_dilated(x2, params["w1_t"], (1, 1), "VALID",
                                 dimension_numbers=dn,
                                 precision=lax.Precision.HIGHEST)
    t = jnp.maximum(bn(t, params["bn1"]), 0.0)
    t = lax.conv_general_dilated(t, params["wd_t"], (1, 1), ((1, 1), (1, 1)),
                                 dimension_numbers=dn, feature_group_count=bf,
                                 precision=lax.Precision.HIGHEST)
    t = bn(t, params["bn2"])
    t = lax.conv_general_dilated(t, params["w2_t"], (1, 1), "VALID",
                                 dimension_numbers=dn,
                                 precision=lax.Precision.HIGHEST)
    t = jnp.maximum(bn(t, params["bn3"]), 0.0)

    out = jnp.concatenate([x1, t], axis=1)
    # channel_shuffle(out, 2)
    out = out.reshape(N, 2, bf, H, W)
    out = jnp.transpose(out, (0, 2, 1, 3, 4)).reshape(N, C, H, W)
    return out


# -----------------------------------------------------------------------------
if __name__ == "__main__":
    key = jax.random.PRNGKey(0)
    N, C, H, W = 2, 4, 16, 16           # input_c = output_c = 4, stride = 1
    bf = C // 2

    ks = jax.random.split(key, 16)
    x = jax.random.normal(ks[0], (N, C, H, W), jnp.float32)

    def bn_params(k):
        k1, k2, k3, k4 = jax.random.split(k, 4)
        gamma = 1.0 + 0.1 * jax.random.normal(k1, (bf,), jnp.float32)
        beta = 0.1 * jax.random.normal(k2, (bf,), jnp.float32)
        mean = 0.1 * jax.random.normal(k3, (bf,), jnp.float32)
        var = jax.random.uniform(k4, (bf,), jnp.float32, 0.5, 1.5)
        return (gamma, beta, mean, var)

    params = {
        "w1_t": 0.5 * jax.random.normal(ks[1], (bf, bf, 1, 1), jnp.float32),
        "bn1": bn_params(ks[2]),
        "wd_t": 0.5 * jax.random.normal(ks[3], (bf, 1, 3, 3), jnp.float32),
        "bn2": bn_params(ks[4]),
        "w2_t": 0.5 * jax.random.normal(ks[5], (bf, bf, 1, 1), jnp.float32),
        "bn3": bn_params(ks[6]),
    }

    out = jax.block_until_ready(inverted_residual_stride1(x, params))
    ref = jax.block_until_ready(reference(x, params))

    np.testing.assert_allclose(np.asarray(out), np.asarray(ref),
                               rtol=2e-4, atol=2e-5)
    assert out.shape == (N, C, H, W) and out.dtype == jnp.float32

    print("KERNEL_OK")
</pallas_src>

<mosaic_0001>
module attributes {stable_mosaic.version = 11 : i64} {
  func.func @_branch2_kernel(%arg0: i32, %arg1: i32, %arg2: memref<1x8x16x128xf32, #tpu.memory_space<vmem>>, %arg3: memref<1x1x16x128xf32, #tpu.memory_space<vmem>>, %arg4: memref<1x1x16x128xf32, #tpu.memory_space<vmem>>, %arg5: memref<128x128xf32, #tpu.memory_space<vmem>>, %arg6: memref<9x128xf32, #tpu.memory_space<vmem>>, %arg7: memref<128x128xf32, #tpu.memory_space<vmem>>, %arg8: memref<1x8x16x128xf32, #tpu.memory_space<vmem>>) attributes {dimension_semantics = [#tpu.dimension_semantics<parallel>, #tpu.dimension_semantics<parallel>], iteration_bounds = array<i64: 2, 2>, scalar_prefetch = 0 : i64, scratch_operands = 0 : i64, tpu.core_type = #tpu.core_type<tc>, window_params = [{transform_indices = @transform_0, window_bounds = array<i64: 1, 8, 16, 128>}, {transform_indices = @transform_1, window_bounds = array<i64: 1, 1, 16, 128>}, {transform_indices = @transform_2, window_bounds = array<i64: 1, 1, 16, 128>}, {pipeline_mode = #tpu.pipeline_mode<synchronous>, transform_indices = @transform_3, window_bounds = array<i64: 128, 128>}, {pipeline_mode = #tpu.pipeline_mode<synchronous>, transform_indices = @transform_4, window_bounds = array<i64: 9, 128>}, {pipeline_mode = #tpu.pipeline_mode<synchronous>, transform_indices = @transform_5, window_bounds = array<i64: 128, 128>}, {transform_indices = @transform_6, window_bounds = array<i64: 1, 8, 16, 128>}]} {
    %c0 = arith.constant 0 : index
    %c0_0 = arith.constant 0 : index
    %c0_1 = arith.constant 0 : index
    %c0_2 = arith.constant 0 : index
    %0 = vector.load %arg2[%c0, %c0_0, %c0_1, %c0_2] : memref<1x8x16x128xf32, #tpu.memory_space<vmem>>, vector<1x8x16x128xf32>
    %1 = vector.shape_cast %0 : vector<1x8x16x128xf32> to vector<8x16x128xf32>
    %c0_3 = arith.constant 0 : index
    %c0_4 = arith.constant 0 : index
    %c0_5 = arith.constant 0 : index
    %c0_6 = arith.constant 0 : index
    %2 = vector.load %arg3[%c0_3, %c0_4, %c0_5, %c0_6] : memref<1x1x16x128xf32, #tpu.memory_space<vmem>>, vector<1x1x16x128xf32>
    %3 = vector.shape_cast %2 : vector<1x1x16x128xf32> to vector<1x16x128xf32>
    %c0_7 = arith.constant 0 : index
    %c0_8 = arith.constant 0 : index
    %c0_9 = arith.constant 0 : index
    %c0_10 = arith.constant 0 : index
    %4 = vector.load %arg4[%c0_7, %c0_8, %c0_9, %c0_10] : memref<1x1x16x128xf32, #tpu.memory_space<vmem>>, vector<1x1x16x128xf32>
    %5 = vector.shape_cast %4 : vector<1x1x16x128xf32> to vector<1x16x128xf32>
    %6 = tpu.concatenate %1, %3, %5 in 0 : vector<8x16x128xf32>, vector<1x16x128xf32>, vector<1x16x128xf32> -> vector<10x16x128xf32>
    %7 = vector.shape_cast %6 : vector<10x16x128xf32> to vector<160x128xf32>
    %c0_11 = arith.constant 0 : index
    %c0_12 = arith.constant 0 : index
    %8 = vector.load %arg5[%c0_11, %c0_12] : memref<128x128xf32, #tpu.memory_space<vmem>>, vector<128x128xf32>
    %cst = arith.constant dense<0.000000e+00> : vector<160x128xf32>
    %9 = tpu.matmul %7, %8, %cst {dimension_numbers = #tpu.dot_dimension_numbers<[1], [0], [0], [1], [0, 0, 1, 1], [], []>} : vector<160x128xf32>, vector<128x128xf32>, vector<160x128xf32> -> vector<160x128xf32>
    %cst_13 = arith.constant 0.000000e+00 : f32
    %10 = vector.broadcast %cst_13 : f32 to vector<160x128xf32>
    %11 = arith.maximumf %9, %10 : vector<160x128xf32>
    %12 = vector.shape_cast %11 : vector<160x128xf32> to vector<10x16x128xf32>
    %cst_14 = arith.constant 0.000000e+00 : f32
    %13 = vector.broadcast %cst_14 : f32 to vector<10x1x128xf32>
    %14 = vector.extract_strided_slice %12 {offsets = [0, 0, 0], sizes = [10, 15, 128], strides = [1, 1, 1]} : vector<10x16x128xf32> to vector<10x15x128xf32>
    %15 = tpu.concatenate %13, %14 in 1 : vector<10x1x128xf32>, vector<10x15x128xf32> -> vector<10x16x128xf32>
    %16 = vector.extract_strided_slice %12 {offsets = [0, 1, 0], sizes = [10, 15, 128], strides = [1, 1, 1]} : vector<10x16x128xf32> to vector<10x15x128xf32>
    %17 = tpu.concatenate %16, %13 in 1 : vector<10x15x128xf32>, vector<10x1x128xf32> -> vector<10x16x128xf32>
    %cst_15 = arith.constant 0.000000e+00 : f32
    %18 = vector.broadcast %cst_15 : f32 to vector<8x16x128xf32>
    %19 = vector.extract_strided_slice %15 {offsets = [0, 0, 0], sizes = [8, 16, 128], strides = [1, 1, 1]} : vector<10x16x128xf32> to vector<8x16x128xf32>
    %c0_16 = arith.constant 0 : index
    %c0_17 = arith.constant 0 : index
    %20 = vector.load %arg6[%c0_16, %c0_17] : memref<9x128xf32, #tpu.memory_space<vmem>>, vector<1x128xf32>
    %21 = vector.shape_cast %20 : vector<1x128xf32> to vector<128xf32>
    %22 = vector.shape_cast %21 : vector<128xf32> to vector<1x1x128xf32>
    %23 = vector.broadcast %22 : vector<1x1x128xf32> to vector<8x16x128xf32>
    %24 = arith.mulf %19, %23 : vector<8x16x128xf32>
    %25 = arith.addf %18, %24 : vector<8x16x128xf32>
    %26 = vector.extract_strided_slice %15 {offsets = [1, 0, 0], sizes = [8, 16, 128], strides = [1, 1, 1]} : vector<10x16x128xf32> to vector<8x16x128xf32>
    %c3 = arith.constant 3 : index
    %c0_18 = arith.constant 0 : index
    %27 = vector.load %arg6[%c3, %c0_18] : memref<9x128xf32, #tpu.memory_space<vmem>>, vector<1x128xf32>
    %28 = vector.shape_cast %27 : vector<1x128xf32> to vector<128xf32>
    %29 = vector.shape_cast %28 : vector<128xf32> to vector<1x1x128xf32>
    %30 = vector.broadcast %29 : vector<1x1x128xf32> to vector<8x16x128xf32>
    %31 = arith.mulf %26, %30 : vector<8x16x128xf32>
    %32 = arith.addf %25, %31 : vector<8x16x128xf32>
    %33 = vector.extract_strided_slice %15 {offsets = [2, 0, 0], sizes = [8, 16, 128], strides = [1, 1, 1]} : vector<10x16x128xf32> to vector<8x16x128xf32>
    %c6 = arith.constant 6 : index
    %c0_19 = arith.constant 0 : index
    %34 = vector.load %arg6[%c6, %c0_19] : memref<9x128xf32, #tpu.memory_space<vmem>>, vector<1x128xf32>
    %35 = vector.shape_cast %34 : vector<1x128xf32> to vector<128xf32>
    %36 = vector.shape_cast %35 : vector<128xf32> to vector<1x1x128xf32>
    %37 = vector.broadcast %36 : vector<1x1x128xf32> to vector<8x16x128xf32>
    %38 = arith.mulf %33, %37 : vector<8x16x128xf32>
    %39 = arith.addf %32, %38 : vector<8x16x128xf32>
    %40 = vector.extract_strided_slice %12 {offsets = [0, 0, 0], sizes = [8, 16, 128], strides = [1, 1, 1]} : vector<10x16x128xf32> to vector<8x16x128xf32>
    %c1 = arith.constant 1 : index
    %c0_20 = arith.constant 0 : index
    %41 = vector.load %arg6[%c1, %c0_20] : memref<9x128xf32, #tpu.memory_space<vmem>>, vector<1x128xf32>
    %42 = vector.shape_cast %41 : vector<1x128xf32> to vector<128xf32>
    %43 = vector.shape_cast %42 : vector<128xf32> to vector<1x1x128xf32>
    %44 = vector.broadcast %43 : vector<1x1x128xf32> to vector<8x16x128xf32>
    %45 = arith.mulf %40, %44 : vector<8x16x128xf32>
    %46 = arith.addf %39, %45 : vector<8x16x128xf32>
    %47 = vector.extract_strided_slice %12 {offsets = [1, 0, 0], sizes = [8, 16, 128], strides = [1, 1, 1]} : vector<10x16x128xf32> to vector<8x16x128xf32>
    %c4 = arith.constant 4 : index
    %c0_21 = arith.constant 0 : index
    %48 = vector.load %arg6[%c4, %c0_21] : memref<9x128xf32, #tpu.memory_space<vmem>>, vector<1x128xf32>
    %49 = vector.shape_cast %48 : vector<1x128xf32> to vector<128xf32>
    %50 = vector.shape_cast %49 : vector<128xf32> to vector<1x1x128xf32>
    %51 = vector.broadcast %50 : vector<1x1x128xf32> to vector<8x16x128xf32>
    %52 = arith.mulf %47, %51 : vector<8x16x128xf32>
    %53 = arith.addf %46, %52 : vector<8x16x128xf32>
    %54 = vector.extract_strided_slice %12 {offsets = [2, 0, 0], sizes = [8, 16, 128], strides = [1, 1, 1]} : vector<10x16x128xf32> to vector<8x16x128xf32>
    %c7 = arith.constant 7 : index
    %c0_22 = arith.constant 0 : index
    %55 = vector.load %arg6[%c7, %c0_22] : memref<9x128xf32, #tpu.memory_space<vmem>>, vector<1x128xf32>
    %56 = vector.shape_cast %55 : vector<1x128xf32> to vector<128xf32>
    %57 = vector.shape_cast %56 : vector<128xf32> to vector<1x1x128xf32>
    %58 = vector.broadcast %57 : vector<1x1x128xf32> to vector<8x16x128xf32>
    %59 = arith.mulf %54, %58 : vector<8x16x128xf32>
    %60 = arith.addf %53, %59 : vector<8x16x128xf32>
    %61 = vector.extract_strided_slice %17 {offsets = [0, 0, 0], sizes = [8, 16, 128], strides = [1, 1, 1]} : vector<10x16x128xf32> to vector<8x16x128xf32>
    %c2 = arith.constant 2 : index
    %c0_23 = arith.constant 0 : index
    %62 = vector.load %arg6[%c2, %c0_23] : memref<9x128xf32, #tpu.memory_space<vmem>>, vector<1x128xf32>
    %63 = vector.shape_cast %62 : vector<1x128xf32> to vector<128xf32>
    %64 = vector.shape_cast %63 : vector<128xf32> to vector<1x1x128xf32>
    %65 = vector.broadcast %64 : vector<1x1x128xf32> to vector<8x16x128xf32>
    %66 = arith.mulf %61, %65 : vector<8x16x128xf32>
    %67 = arith.addf %60, %66 : vector<8x16x128xf32>
    %68 = vector.extract_strided_slice %17 {offsets = [1, 0, 0], sizes = [8, 16, 128], strides = [1, 1, 1]} : vector<10x16x128xf32> to vector<8x16x128xf32>
    %c5 = arith.constant 5 : index
    %c0_24 = arith.constant 0 : index
    %69 = vector.load %arg6[%c5, %c0_24] : memref<9x128xf32, #tpu.memory_space<vmem>>, vector<1x128xf32>
    %70 = vector.shape_cast %69 : vector<1x128xf32> to vector<128xf32>
    %71 = vector.shape_cast %70 : vector<128xf32> to vector<1x1x128xf32>
    %72 = vector.broadcast %71 : vector<1x1x128xf32> to vector<8x16x128xf32>
    %73 = arith.mulf %68, %72 : vector<8x16x128xf32>
    %74 = arith.addf %67, %73 : vector<8x16x128xf32>
    %75 = vector.extract_strided_slice %17 {offsets = [2, 0, 0], sizes = [8, 16, 128], strides = [1, 1, 1]} : vector<10x16x128xf32> to vector<8x16x128xf32>
    %c8 = arith.constant 8 : index
    %c0_25 = arith.constant 0 : index
    %76 = vector.load %arg6[%c8, %c0_25] : memref<9x128xf32, #tpu.memory_space<vmem>>, vector<1x128xf32>
    %77 = vector.shape_cast %76 : vector<1x128xf32> to vector<128xf32>
    %78 = vector.shape_cast %77 : vector<128xf32> to vector<1x1x128xf32>
    %79 = vector.broadcast %78 : vector<1x1x128xf32> to vector<8x16x128xf32>
    %80 = arith.mulf %75, %79 : vector<8x16x128xf32>
    %81 = arith.addf %74, %80 : vector<8x16x128xf32>
    %82 = vector.shape_cast %81 : vector<8x16x128xf32> to vector<128x128xf32>
    %c0_26 = arith.constant 0 : index
    %c0_27 = arith.constant 0 : index
    %83 = vector.load %arg7[%c0_26, %c0_27] : memref<128x128xf32, #tpu.memory_space<vmem>>, vector<128x128xf32>
    %cst_28 = arith.constant dense<0.000000e+00> : vector<128x128xf32>
    %84 = tpu.matmul %82, %83, %cst_28 {dimension_numbers = #tpu.dot_dimension_numbers<[1], [0], [0], [1], [0, 0, 1, 1], [], []>} : vector<128x128xf32>, vector<128x128xf32>, vector<128x128xf32> -> vector<128x128xf32>
    %cst_29 = arith.constant 0.000000e+00 : f32
    %85 = vector.broadcast %cst_29 : f32 to vector<128x128xf32>
    %86 = arith.maximumf %84, %85 : vector<128x128xf32>
    %87 = vector.shape_cast %86 : vector<128x128xf32> to vector<8x16x128xf32>
    %c0_30 = arith.constant 0 : index
    %c0_31 = arith.constant 0 : index
    %c0_32 = arith.constant 0 : index
    %c0_33 = arith.constant 0 : index
    %88 = vector.load %arg8[%c0_30, %c0_31, %c0_32, %c0_33] : memref<1x8x16x128xf32, #tpu.memory_space<vmem>>, vector<1x8x16x128xf32>
    %89 = vector.shape_cast %88 : vector<1x8x16x128xf32> to vector<8x16x128xf32>
    %90 = vector.shape_cast %87 : vector<8x16x128xf32> to vector<1x8x16x128xf32>
    tpu.vector_store %arg8[%c0_30, %c0_31, %c0_32, %c0_33], %90 {strides = array<i32>} : memref<1x8x16x128xf32, #tpu.memory_space<vmem>>, vector<1x8x16x128xf32>,
    return
  }
  func.func @transform_0(%arg0: i32, %arg1: i32) -> (i32, i32, i32, i32) {
    %c0_i32 = arith.constant 0 : i32
    %c0_i32_0 = arith.constant 0 : i32
    %c0_i32_1 = arith.constant 0 : i32
    return %arg0, %arg1, %c0_i32, %c0_i32_0 : i32, i32, i32, i32
  }
  func.func @transform_1(%arg0: i32, %arg1: i32) -> (i32, i32, i32, i32) {
    %c8_i32 = arith.constant 8 : i32
    %0 = arith.muli %arg1, %c8_i32 : i32
    %c8_i32_0 = arith.constant 8 : i32
    %1 = arith.addi %0, %c8_i32_0 : i32
    %c0_i32 = arith.constant 0 : i32
    %c0_i32_1 = arith.constant 0 : i32
    %c0_i32_2 = arith.constant 0 : i32
    return %arg0, %1, %c0_i32, %c0_i32_1 : i32, i32, i32, i32
  }
  func.func @transform_2(%arg0: i32, %arg1: i32) -> (i32, i32, i32, i32) {
    %c8_i32 = arith.constant 8 : i32
    %0 = arith.muli %arg1, %c8_i32 : i32
    %c8_i32_0 = arith.constant 8 : i32
    %1 = arith.addi %0, %c8_i32_0 : i32
    %c1_i32 = arith.constant 1 : i32
    %2 = arith.addi %1, %c1_i32 : i32
    %c0_i32 = arith.constant 0 : i32
    %c0_i32_1 = arith.constant 0 : i32
    %c0_i32_2 = arith.constant 0 : i32
    return %arg0, %2, %c0_i32, %c0_i32_1 : i32, i32, i32, i32
  }
  func.func @transform_3(%arg0: i32, %arg1: i32) -> (i32, i32) {
    %c0_i32 = arith.constant 0 : i32
    %c0_i32_0 = arith.constant 0 : i32
    %c0_i32_1 = arith.constant 0 : i32
    return %c0_i32, %c0_i32_0 : i32, i32
  }
  func.func @transform_4(%arg0: i32, %arg1: i32) -> (i32, i32) {
    %c0_i32 = arith.constant 0 : i32
    %c0_i32_0 = arith.constant 0 : i32
    %c0_i32_1 = arith.constant 0 : i32
    return %c0_i32, %c0_i32_0 : i32, i32
  }
  func.func @transform_5(%arg0: i32, %arg1: i32) -> (i32, i32) {
    %c0_i32 = arith.constant 0 : i32
    %c0_i32_0 = arith.constant 0 : i32
    %c0_i32_1 = arith.constant 0 : i32
    return %c0_i32, %c0_i32_0 : i32, i32
  }
  func.func @transform_6(%arg0: i32, %arg1: i32) -> (i32, i32, i32, i32) {
    %c0_i32 = arith.constant 0 : i32
    %c0_i32_0 = arith.constant 0 : i32
    %c0_i32_1 = arith.constant 0 : i32
    return %arg0, %arg1, %c0_i32, %c0_i32_0 : i32, i32, i32, i32
  }
}

</mosaic_0001>

<bundles_post_ra>
// kernel: squeeze.5
= control target key start
LH: loop header
LB: loop body
LE: loop exit
PB: predicated region body
PF: predicated region fallthrough
CT: control target
= control target key end

     0   :  { %s37_s10 = smov 6   ;;  %s22_s11 = smov 3  ;;  %vm12_vm0 = vcmask 23552   ;;  %vm19_vm1 = vcmask 72752   ;;  %vm26_vm2 = vcmask 48152   ;;  %s58_s0 = inlined_call_operand.vmem [shape: f32[2,3,3], index: 0, kind: input, shape index: {}]   ;;  %s59_s1 = inlined_call_operand.vmem [shape: f32[2,9], index: 1, kind: output, shape index: {}]  }
   0x1   :  { %v34_v0 = vld [vmem:[%s58_s0 + $0x4] sm:$0xf]  ;;  %v8_v1 = vld [vmem:[%s58_s0] sm:$0xf]  ;;  %s15_s0 = smov 3  ;;  %s38_s12 = smov 3  }
   0x2   :  { %7 = vst [vmem:[#allocation1 + $0x8] sm:$0xf] %v34_v0  ;;  %s10_s13 = smov 3 }
   0x3   :  { %9 = vst [vmem:[#allocation1] sm:$0xf] %v8_v1 }
   0xa   :  { %v16_v2 = vld [vmem:[#allocation1 + $0x2] ss:$8 sm:%s15_s0]   ;;  %v23_v3 = vld [vmem:[#allocation1 + $0x1] ss:$8 sm:%s22_s11]   ;;  %v11_v4 = vld [vmem:[#allocation1] ss:$8 sm:%s10_s13]  }
   0xb   :  { %17 = vrot.lane.b32.xlu0 %v16_v2, %s37_s10  ;;  %13 = vst.msk [vmem:[#allocation0] sm:$0x3] %vm12_vm0, %v11_v4  }
  0x13   :  { %24 = vrot.lane.b32.xlu0 %v23_v3, %s38_s12 }
  0x7d   :  { %v18_v5 = vpop.permute.xlu0 %17  }
  0x7e   :  { %20 = vst.msk [vmem:[#allocation0] sm:$0x3] %vm19_vm1, %v18_v5  }
  0x85   :  { %v25_v6 = vpop.permute.xlu0 %24  }
  0x86   :  { %27 = vst.msk [vmem:[#allocation0] sm:$0x3] %vm26_vm2, %v25_v6  }
  0x8d   :  { %v30_v7 = vld [vmem:[#allocation0] sm:$0x3] }
  0x8e   :  { %33 = vst [vmem:[%s59_s1] sm:$0x3] %v30_v7 }

// kernel: inverted_residual_stride1.1
= control target key start
LH: loop header
LB: loop body
LE: loop exit
PB: predicated region body
PF: predicated region fallthrough
CT: control target
= control target key end

     0   :  { %s1433_s21 = smov 0   ;;  %s1435_s22 = smov 0   ;;  %s2226_s0 = inlined_call_operand.vmem [shape: f32[2,18,16,128], index: 0, kind: input, shape index: {}, may-alias: {0,1,2}]   ;;  %s2227_s1 = inlined_call_operand.vmem [shape: f32[2,18,16,128], index: 1, kind: input, shape index: {}, may-alias: {0,1,2}]   ;;  %s2228_s2 = inlined_call_operand.vmem [shape: f32[2,18,16,128], index: 2, kind: input, shape index: {}, may-alias: {0,1,2}]   ;;  %s2229_s3 = inlined_call_operand.vmem [shape: f32[128,128], index: 3, kind: input, shape index: {}]   ;;  %s2230_s4 = inlined_call_operand.vmem [shape: f32[9,128], index: 4, kind: input, shape index: {}]   ;;  %s2231_s5 = inlined_call_operand.vmem [shape: f32[128,128], index: 5, kind: input, shape index: {}]   ;;  %s2232_s6 = inlined_call_operand.vmem [shape: f32[2,16,16,128], index: 6, kind: output, shape index: {}]  }
   0x1   :  { %s1437_s23 = smov 0   ;;  %s1439_s24 = smov 0  }
   0x2   :  { %s1441_s25 = smov 0  }
   0x3 LB: > { %s25_s26 = sadd.s32 1, %s1388_s23  ;;  %s28_s27 = sadd.s32 1, %s1392_s24  ;;  %s1396_s25 = sphi %s1441_s25, %s16_s25   ;;  %s1392_s24 = sphi %s1439_s24, %s2302_s24   ;;  %s1388_s23 = sphi %s1437_s23, %s2301_s23   ;;  %s1384_s22 = sphi %s1435_s22, %s2300_s22   ;;  %s1380_s21 = sphi %s1433_s21, %s2299_s21  }
   0x4   : > { %p26_p0 = scmp.ge.s32.totalorder %s25_s26, 2  ;;  %p1260_p1 = scmp.ge.s32.totalorder %s1396_s25, 1 }
   0x5   : > { %p292_p2 = scmp.lt.s32.totalorder %s1396_s25, 5 }
   0x6   : > { %s2304_s26 = smov (%p26_p0, %s25_s26), 0  ;;  %s2306_s27 = smov (!%p26_p0, %s28_s27), %s1392_s24 }
   0x7   : > { %p293_p3 = pnand %p1260_p1, %p292_p2  ;;  %p30_p4 = scmp.ge.s32.totalorder %s2306_s27, 2 }
   0x9   : > { %s2308_s27 = smov (%p30_p4, %s2306_s27), 0  ;;  %296 = sbr.rel (%p293_p3) target bundleno = 423 (0x1a7), region = 44 }
   0xe   : > { %v452_v0 = vld [vmem:[%s2229_s3 + $0x78] sm:$0xff]  ;;  %v451_v1 = vld [vmem:[%s2229_s3 + $0x70] sm:$0xff]  ;;  %v450_v2 = vld [vmem:[%s2229_s3 + $0x68] sm:$0xff]  ;;  %s1480_s14 = sshll.u32 %s1380_s21, 3  ;;  %p365_p5 = scmp.lt.s32.totalorder %s1384_s22, 1  ;;  %vm570_vm0 = vcmask 1040384  }
   0xf   : > { %453 = vmatpush.msra.mxu0 %v452_v0  ;;  %1276 = vmatpush.msra.mxu2 %v452_v0  ;;  %v449_v3 = vld [vmem:[%s2229_s3 + $0x60] sm:$0xff]  ;;  %v448_v4 = vld [vmem:[%s2229_s3 + $0x58] sm:$0xff]  ;;  %v447_v5 = vld [vmem:[%s2229_s3 + $0x50] sm:$0xff]  ;;  %p367_p6 = scmp.lt.s32.totalorder %s1480_s14, 17  ;;  %s381_s11 = sadd.s32 8, %s1480_s14  ;;  %vm631_vm1 = vcmask 1046528  }
  0x10   : > { %v446_v6 = vld [vmem:[%s2229_s3 + $0x48] sm:$0xff]  ;;  %v445_v7 = vld [vmem:[%s2229_s3 + $0x40] sm:$0xff]  ;;  %s2310_s22 = smov (!%p365_p5, %s1384_s22), 1  ;;  %v444_v8 = vld [vmem:[%s2229_s3 + $0x38] sm:$0xff]  ;;  %p384_p7 = scmp.lt.s32.totalorder %s381_s11, 17 }
  0x11   : > { %454 = vmatpush.msra.mxu0 %v451_v1  ;;  %1277 = vmatpush.msra.mxu2 %v451_v1  ;;  %s368_s21 = scalar_select %p367_p6, %s1480_s14, 17  ;;  %v443_v9 = vld [vmem:[%s2229_s3 + $0x30] sm:$0xff]  ;;  %v442_v10 = vld [vmem:[%s2229_s3 + $0x28] sm:$0xff]  ;;  %v441_v11 = vld [vmem:[%s2229_s3 + $0x20] sm:$0xff] }
  0x12   : > { %s1504_s8 = smul.u32 36, %s2310_s22  ;;  %v440_v12 = vld [vmem:[%s2229_s3 + $0x18] sm:$0xff]  ;;  %v439_v13 = vld [vmem:[%s2229_s3 + $0x10] sm:$0xff]  ;;  %v438_v14 = vld [vmem:[%s2229_s3 + $0x8] sm:$0xff]  ;;  %s2312_s11 = smov (!%p384_p7, %s381_s11), 17 }
  0x13   : > { %455 = vmatpush.msra.mxu0 %v450_v2  ;;  %1278 = vmatpush.msra.mxu2 %v450_v2  ;;  %s1262_s9 = sshll.u32 %s368_s21, 1  ;;  %v437_v15 = vld [vmem:[%s2229_s3] sm:$0xff]  ;;  %s1265_s12 = sshll.u32 %s2312_s11, 1  ;;  %v1013_v36 = vld [vmem:[%s2231_s5 + $0x78] sm:$0xff]  ;;  %v1012_v37 = vld [vmem:[%s2231_s5 + $0x70] sm:$0xff] }
  0x14   : > { %s371_s15 = sadd.s32 %s1504_s8, %s1262_s9  ;;  %s388_s13 = sadd.s32 %s1504_s8, %s1265_s12  ;;  %1014 = vmatpush.msra.mxu1 %v1013_v36  ;;  %1292 = vmatpush.msra.mxu3 %v1013_v36  ;;  %v1011_v38 = vld [vmem:[%s2231_s5 + $0x68] sm:$0xff]  ;;  %v1010_v39 = vld [vmem:[%s2231_s5 + $0x60] sm:$0xff]  ;;  %v1009_v40 = vld [vmem:[%s2231_s5 + $0x58] sm:$0xff] }
  0x15   : > { %456 = vmatpush.msra.mxu0 %v449_v3  ;;  %1279 = vmatpush.msra.mxu2 %v449_v3  ;;  %s1263_s18 = sshll.u32 %s371_s15, 3  ;;  %s394_s15 = sadd.s32 9, %s1480_s14  ;;  %v1008_v42 = vld [vmem:[%s2231_s5 + $0x50] sm:$0xff]  ;;  %v1007_v43 = vld [vmem:[%s2231_s5 + $0x48] sm:$0xff]  ;;  %v1006_v44 = vld [vmem:[%s2231_s5 + $0x40] sm:$0xff] }
  0x16   : > { %s1525_s7 = scalar_lea.vmem %s2226_s0, %s1263_s18  ;;  %s1266_s16 = sshll.u32 %s388_s13, 3  ;;  %1015 = vmatpush.msra.mxu1 %v1012_v37  ;;  %1293 = vmatpush.msra.mxu3 %v1012_v37  ;;  %v1005_v46 = vld [vmem:[%s2231_s5 + $0x38] sm:$0xff]  ;;  %v1004_v48 = vld [vmem:[%s2231_s5 + $0x30] sm:$0xff]  ;;  %v1003_v50 = vld [vmem:[%s2231_s5 + $0x28] sm:$0xff] }
  0x17   : > { %457 = vmatpush.msra.mxu0 %v448_v4  ;;  %1280 = vmatpush.msra.mxu2 %v448_v4  ;;  %v417_v16 = vld [vmem:[%s1525_s7] sm:$0xff]  ;;  %v418_v18 = vld [vmem:[%s1525_s7 + $0x8] sm:$0xff]  ;;  %v419_v20 = vld [vmem:[%s1525_s7 + $0x10] sm:$0xff]  ;;  %p397_p8 = scmp.lt.s32.totalorder %s394_s15, 17  ;;  %s390_s19 = scalar_lea.vmem %s2227_s1, %s1266_s16 }
  0x18   : > { %v425_v17 = vld [vmem:[%s1525_s7 + $0x40] sm:$0xff]  ;;  %v426_v19 = vld [vmem:[%s1525_s7 + $0x48] sm:$0xff]  ;;  %v427_v21 = vld [vmem:[%s1525_s7 + $0x50] sm:$0xff]  ;;  %1016 = vmatpush.msra.mxu1 %v1011_v38  ;;  %1294 = vmatpush.msra.mxu3 %v1011_v38  ;;  %p409_p9 = scmp.lt.s32.totalorder %s1480_s14, 15  ;;  %s1272_s9 = sshll.u32 %s2310_s22, 5 }
  0x19   : > { %458 = vmatpush.msra.mxu0 %v447_v5  ;;  %1281 = vmatpush.msra.mxu2 %v447_v5  ;;  %v420_v22 = vld [vmem:[%s1525_s7 + $0x18] sm:$0xff]  ;;  %v421_v24 = vld [vmem:[%s1525_s7 + $0x20] sm:$0xff]  ;;  %v422_v26 = vld [vmem:[%s1525_s7 + $0x28] sm:$0xff]  ;;  %s2314_s15 = smov (!%p397_p8, %s394_s15), 17 }
  0x1a   : > { %v428_v23 = vld [vmem:[%s1525_s7 + $0x58] sm:$0xff]  ;;  %v429_v25 = vld [vmem:[%s1525_s7 + $0x60] sm:$0xff]  ;;  %v430_v27 = vld [vmem:[%s1525_s7 + $0x68] sm:$0xff]  ;;  %s1268_s20 = sshll.u32 %s2314_s15, 1  ;;  %1017 = vmatpush.msra.mxu1 %v1010_v39  ;;  %1295 = vmatpush.msra.mxu3 %v1010_v39  ;;  %s2316_s14 = smov (!%p409_p9, %s1480_s14), 15 }
  0x1b   : > { %459 = vmatpush.msra.mxu0 %v446_v6  ;;  %1282 = vmatpush.msra.mxu2 %v446_v6  ;;  %v423_v28 = vld [vmem:[%s1525_s7 + $0x30] sm:$0xff]  ;;  %v424_v30 = vld [vmem:[%s1525_s7 + $0x38] sm:$0xff]  ;;  %v433_v32 = vld [vmem:[%s390_s19] sm:$0xff]  ;;  %s401_s21 = sadd.s32 %s1504_s8, %s1268_s20 }
  0x1c   : > { %v431_v29 = vld [vmem:[%s1525_s7 + $0x70] sm:$0xff]  ;;  %v432_v31 = vld [vmem:[%s1525_s7 + $0x78] sm:$0xff]  ;;  %v434_v33 = vld [vmem:[%s390_s19 + $0x8] sm:$0xff]  ;;  %s1269_s28 = sshll.u32 %s401_s21, 3  ;;  %1018 = vmatpush.msra.mxu1 %v1009_v40  ;;  %1296 = vmatpush.msra.mxu3 %v1009_v40 }
  0x1d   : > { %460 = vmatpush.msra.mxu0 %v445_v7  ;;  %1283 = vmatpush.msra.mxu2 %v445_v7  ;;  %s403_s7 = scalar_lea.vmem %s2228_s2, %s1269_s28  ;;  %v1002_v52 = vld [vmem:[%s2231_s5 + $0x20] sm:$0xff]  ;;  %v1001_v56 = vld [vmem:[%s2231_s5 + $0x18] sm:$0xff]  ;;  %v1000_v61 = vld [vmem:[%s2231_s5 + $0x10] sm:$0xff] }
  0x1e   : > { %v435_v34 = vld [vmem:[%s403_s7] sm:$0xff]  ;;  %v436_v35 = vld [vmem:[%s403_s7 + $0x8] sm:$0xff]  ;;  %1019 = vmatpush.msra.mxu1 %v1008_v42  ;;  %1297 = vmatpush.msra.mxu3 %v1008_v42  ;;  %s1271_s7 = sshll.u32 %s2316_s14, 1 }
  0x1f   : > { %461 = vmatpush.msra.mxu0 %v444_v8  ;;  %1284 = vmatpush.msra.mxu2 %v444_v8  ;;  %v1600_v57 = vld [vmem:[%s2230_s4] ss:$0 sm:$0xff]  ;;  %v1605_v58 = vld [vmem:[%s2230_s4 + $0x1] ss:$0 sm:$0xff]  ;;  %v1619_v3 = vld [vmem:[%s2230_s4 + $0x4] ss:$0 sm:$0xff]  ;;  %s413_s10 = sadd.s32 %s1272_s9, %s1271_s7 }
  0x20   : > { %1020 = vmatpush.msra.mxu1 %v1007_v43  ;;  %1298 = vmatpush.msra.mxu3 %v1007_v43  ;;  %v999_v4 = vld [vmem:[%s2231_s5 + $0x8] sm:$0xff]  ;;  %v1627_v5 = vld [vmem:[%s2230_s4 + $0x3] ss:$0 sm:$0xff]  ;;  %v1632_v6 = vld [vmem:[%s2230_s4 + $0x7] ss:$0 sm:$0xff]  ;;  %s1273_s11 = sshll.u32 %s413_s10, 3 }
  0x21   : > { %462 = vmatpush.msra.mxu0 %v443_v9  ;;  %1285 = vmatpush.msra.mxu2 %v443_v9  ;;  %v1706_v39 = vld [vmem:[%s2230_s4 + $0x5] ss:$0 sm:$0xff]  ;;  %s2193_s13 = scalar_lea.vmem %s2232_s6, %s1273_s11 }
  0x22   : > { %1021 = vmatpush.msra.mxu1 %v1006_v44  ;;  %1299 = vmatpush.msra.mxu3 %v1006_v44 }
  0x23   : > { %463 = vmatpush.msra.mxu0 %v442_v10  ;;  %1286 = vmatpush.msra.mxu2 %v442_v10 }
  0x24   : > { %1022 = vmatpush.msra.mxu1 %v1005_v46  ;;  %1300 = vmatpush.msra.mxu3 %v1005_v46 }
  0x25   : > { %464 = vmatpush.msra.mxu0 %v441_v11  ;;  %1287 = vmatpush.msra.mxu2 %v441_v11  ;;  %v998_v11 = vld [vmem:[%s2231_s5] sm:$0xff] }
  0x26   : > { %1023 = vmatpush.msra.mxu1 %v1004_v48  ;;  %1301 = vmatpush.msra.mxu3 %v1004_v48 }
  0x27   : > { %465 = vmatpush.msra.mxu0 %v440_v12  ;;  %1288 = vmatpush.msra.mxu2 %v440_v12  ;;  %v1645_v12 = vld [vmem:[%s2230_s4 + $0x6] ss:$0 sm:$0xff] }
  0x28   : > { %1024 = vmatpush.msra.mxu1 %v1003_v50  ;;  %1302 = vmatpush.msra.mxu3 %v1003_v50 }
  0x29   : > { %466 = vmatpush.msra.mxu0 %v439_v13  ;;  %1289 = vmatpush.msra.mxu2 %v439_v13 }
  0x2a   : > { %1025 = vmatpush.msra.mxu1 %v1002_v52  ;;  %1303 = vmatpush.msra.mxu3 %v1002_v52 }
  0x2b   : > { %467 = vmatpush.msra.mxu0 %v438_v14  ;;  %1290 = vmatpush.msra.mxu2 %v438_v14 }
  0x2c   : > { %1026 = vmatpush.msra.mxu1 %v1001_v56  ;;  %1304 = vmatpush.msra.mxu3 %v1001_v56 }
  0x2d   : > { %468 = vmatpush.msra.mxu0 %v437_v15  ;;  %1291 = vmatpush.msra.mxu2 %v437_v15 }
  0x2e   : > { %469 = vmatmul.f32.vlgmr.msra.gmra.mxu0 %v417_v16  ;;  %493 = vmatmul.f32.vlgmr.msra.gmra.mxu2 %v425_v17  ;;  %v1656_v16 = vld [vmem:[%s2230_s4 + $0x2] ss:$0 sm:$0xff] }
  0x2f   : > { %1027 = vmatpush.msra.mxu1 %v1000_v61  ;;  %1305 = vmatpush.msra.mxu3 %v1000_v61 }
  0x31   : > { %1028 = vmatpush.msra.mxu1 %v999_v4  ;;  %1306 = vmatpush.msra.mxu3 %v999_v4 }
  0x33   : > { %1029 = vmatpush.msra.mxu1 %v998_v11  ;;  %1307 = vmatpush.msra.mxu3 %v998_v11 }
  0x36   : > { %472 = vmatmul.f32.gmra.mxu0 %v418_v18  ;;  %496 = vmatmul.f32.gmra.mxu2 %v426_v19 }
  0x3e   : > { %475 = vmatmul.f32.gmra.mxu0 %v419_v20  ;;  %499 = vmatmul.f32.gmra.mxu2 %v427_v21 }
  0x46   : > { %478 = vmatmul.f32.gmra.mxu0 %v420_v22  ;;  %502 = vmatmul.f32.gmra.mxu2 %v428_v23 }
  0x4e   : > { %481 = vmatmul.f32.gmra.mxu0 %v421_v24  ;;  %505 = vmatmul.f32.gmra.mxu2 %v429_v25 }
  0x56   : > { %484 = vmatmul.f32.gmra.mxu0 %v422_v26  ;;  %508 = vmatmul.f32.gmra.mxu2 %v430_v27 }
  0x5e   : > { %487 = vmatmul.f32.gmra.mxu0 %v423_v28  ;;  %511 = vmatmul.f32.gmra.mxu2 %v431_v29 }
  0x66   : > { %490 = vmatmul.f32.gmra.mxu0 %v424_v30  ;;  %514 = vmatmul.f32.gmra.mxu2 %v432_v31 }
  0x6e   : > { %517 = vmatmul.f32.gmra.mxu2 %v433_v32 }
  0x76   : > { %520 = vmatmul.f32.gmra.mxu2 %v434_v33 }
  0x7e   : > { %523 = vmatmul.f32.gmra.mxu2 %v435_v34 }
  0x86   : > { %526 = vmatmul.f32.gmra.mxu2 %v436_v35  ;;  %v1693_v35 = vld [vmem:[%s2230_s4 + $0x8] ss:$0 sm:$0xff] }
  0xab   : > { %v470_v41 = vpop.f32.mrf.mxu0 }
  0xac   : > { %v530_v49 = vmax.f32 %v470_v41, 0.0 }
  0xae   : > { %v571_v53 = vrot.slane %v530_v49, 7  ;;  %v632_v7 = vrot.slane %v530_v49, 1  ;;  %v1636_v9 = vmul.f32 %v1605_v58, %v530_v49 }
  0xb0   : > { %v621_v62 = vsel %vm570_vm0, 0.0, %v571_v53 }
  0xb1   : > { %v494_v45 = vpop.f32.mrf.mxu2  ;;  %v694_v8 = vmul.f32 %v1600_v57, %v621_v62 }
  0xb2   : > { %v1589_v51 = vmax.f32 %v494_v45, 0.0 }
  0xb3   : > { %v473_v47 = vpop.f32.mrf.mxu0 }
  0xb4   : > { %v531_v54 = vmax.f32 %v473_v47, 0.0  ;;  %v583_v59 = vrot.slane %v1589_v51, 7  ;;  %v1649_v13 = vmul.f32 %v1605_v58, %v1589_v51  ;;  %v644_v17 = vrot.slane %v1589_v51, 1 }
  0xb5   : > { %v1673_v26 = vmul.f32 %v1632_v6, %v1589_v51  ;;  %v1684_v31 = vmul.f32 %v1619_v3, %v1589_v51 }
  0xb6   : > { %v572_v63 = vrot.slane %v531_v54, 7  ;;  %v633_v1 = vrot.slane %v531_v54, 1  ;;  %v625_v10 = vsel %vm570_vm0, 0.0, %v583_v59  ;;  %2241 = vst [vmem:[#allocation2_spill] sm:$0xff] %v1649_v13  ;;  %v1667_v24 = vmul.f32 %v1605_v58, %v531_v54 }
  0xb7   : > { %v1664_v23 = vmul.f32 %v1600_v57, %v625_v10  ;;  %v1676_v27 = vmul.f32 %v1627_v5, %v625_v10  ;;  %v1680_v30 = vmul.f32 %v1645_v12, %v625_v10  ;;  %2244 = vst [vmem:[#allocation5_spill] sm:$0xff] %v1684_v31 }
  0xb8   : > { %v573_v14 = vsel %vm570_vm0, %v571_v53, %v572_v63  ;;  %v682_v18 = vsel %vm631_vm1, %v633_v1, 0.0  ;;  %v634_v21 = vsel %vm631_vm1, %v632_v7, %v633_v1 }
  0xb9   : > { %v497_v55 = vpop.f32.mrf.mxu2  ;;  %2243 = vst [vmem:[#allocation4_spill] sm:$0xff] %v1676_v27  ;;  %v695_v28 = vmul.f32 %v1600_v57, %v573_v14  ;;  %v1688_v34 = vmul.f32 %v1656_v16, %v634_v21  ;;  %v1696_v36 = vmul.f32 %v1656_v16, %v682_v18 }
  0xba   : > { %v1614_v2 = vmax.f32 %v497_v55, 0.0 }
  0xbb   : > { %v476_v60 = vpop.f32.mrf.mxu0 }
  0xbc   : > { %v1612_v0 = vmax.f32 %v476_v60, 0.0  ;;  %v584_v19 = vrot.slane %v1614_v2, 7  ;;  %v645_v22 = vrot.slane %v1614_v2, 1  ;;  %v1701_v38 = vmul.f32 %v1605_v58, %v1614_v2 }
  0xbd   : > { %v1718_v45 = vmul.f32 %v1632_v6, %v1614_v2 }
  0xbe   : > { %v574_v15 = vrot.slane %v1612_v0, 7  ;;  %v585_v37 = vsel %vm570_vm0, %v583_v59, %v584_v19  ;;  %v1709_v40 = vsel %vm631_vm1, %v645_v22, 0.0  ;;  %v1712_v41 = vsel %vm631_vm1, %v644_v17, %v645_v22 }
  0xbf   : > { %2245 = vst [vmem:[#allocation6_spill] sm:$0xff] %v1709_v40  ;;  %v635_v42 = vrot.slane %v1612_v0, 1  ;;  %v1723_v47 = vmul.f32 %v1605_v58, %v1612_v0  ;;  %v1727_v48 = vmul.f32 %v1619_v3, %v1612_v0  ;;  %v703_v50 = vmul.f32 %v1600_v57, %v585_v37 }
  0xc0   : > { %v622_v32 = vsel %vm570_vm0, 0.0, %v574_v15  ;;  %2246 = vst [vmem:[#allocation7_spill] sm:$0xff] %v1712_v41  ;;  %v1732_v51 = vmul.f32 %v1656_v16, %v1709_v40  ;;  %v1736_v52 = vmul.f32 %v1693_v35, %v1712_v41  ;;  %v1739_v53 = vmul.f32 %v1645_v12, %v585_v37 }
  0xc1   : > { %v500_v20 = vpop.f32.mrf.mxu2  ;;  %2247 = vst [vmem:[#allocation8_spill] sm:$0xff] %v1718_v45  ;;  %v728_v46 = vmul.f32 %v1627_v5, %v622_v32  ;;  %v696_v54 = vmul.f32 %v1600_v57, %v622_v32  ;;  %v1745_v59 = vmul.f32 %v1693_v35, %v1709_v40  ;;  %v1749_v60 = vmul.f32 %v1706_v39, %v1712_v41 }
  0xc2   : > { %v1669_v25 = vmax.f32 %v500_v20, 0.0  ;;  %2248 = vst [vmem:[#allocation9_spill] sm:$0xff] %v1736_v52  ;;  %v1753_v63 = vmul.f32 %v1627_v5, %v585_v37  ;;  %v1757_v0 = vmul.f32 %v1619_v3, %v1614_v2 }
  0xc3   : > { %v479_v29 = vpop.f32.mrf.mxu0  ;;  %2249 = vst [vmem:[#allocation10_spill] sm:$0xff] %v1739_v53  ;;  %v744_v1 = vadd.f32 %v728_v46, %v694_v8 }
  0xc4   : > { %2242 = vst [vmem:[#allocation3_spill] sm:$0xff] %v1669_v25  ;;  %v533_v33 = vmax.f32 %v479_v29, 0.0  ;;  %v586_v43 = vrot.slane %v1669_v25, 7  ;;  %v647_v4 = vrot.slane %v1669_v25, 1  ;;  %v1762_v7 = vmul.f32 %v1605_v58, %v1669_v25 }
  0xc5   : > { %2250 = vst [vmem:[#allocation11_spill] sm:$0xff] %v1745_v59  ;;  %v1782_v32 = vmul.f32 %v1632_v6, %v1669_v25 }
  0xc6   : > { %v575_v44 = vrot.slane %v533_v33, 7  ;;  %v636_v49 = vrot.slane %v533_v33, 1  ;;  %2251 = vst [vmem:[#allocation12_spill] sm:$0xff] %v1749_v60  ;;  %v626_v61 = vsel %vm570_vm0, 0.0, %v586_v43  ;;  %v1772_v8 = vmul.f32 %v1605_v58, %v533_v33 }
  0xc7   : > { %2252 = vst [vmem:[#allocation13_spill] sm:$0xff] %v1753_v63  ;;  %v1768_v19 = vmul.f32 %v1600_v57, %v626_v61  ;;  %v736_v2 = vmul.f32 %v1627_v5, %v626_v61  ;;  %v1775_v20 = vmul.f32 %v1619_v3, %v533_v33 }
  0xc8   : > { %v576_v55 = vsel %vm570_vm0, %v574_v15, %v575_v44  ;;  %2253 = vst [vmem:[#allocation14_spill] sm:$0xff] %v1757_v0  ;;  %v637_v11 = vsel %vm631_vm1, %v635_v42, %v636_v49  ;;  %v683_v18 = vsel %vm631_vm1, %v636_v49, 0.0 }
  0xc9   : > { %v503_v56 = vpop.f32.mrf.mxu2  ;;  %v729_v14 = vmul.f32 %v1627_v5, %v576_v55  ;;  %v1778_v21 = vmul.f32 %v1600_v57, %v576_v55  ;;  %2254 = vst [vmem:[#allocation15_spill] sm:$0xff] %v1782_v32  ;;  %v932_v42 = vmul.f32 %v1706_v39, %v637_v11  ;;  %v1787_v44 = vmul.f32 %v1706_v39, %v683_v18 }
  0xca   : > { %v541_v62 = vmax.f32 %v503_v56, 0.0  ;;  %v1790_v46 = vmul.f32 %v1656_v16, %v637_v11  ;;  %v1794_v55 = vmul.f32 %v1656_v16, %v683_v18  ;;  %v1797_v56 = vmul.f32 %v1645_v12, %v626_v61 }
  0xcb   : > { %v482_v10 = vpop.f32.mrf.mxu0  ;;  %v745_v49 = vadd.f32 %v729_v14, %v695_v28  ;;  %v1807_v11 = vadd.f32 %v736_v2, %v1664_v23 }
  0xcc   : > { %v587_v15 = vrot.slane %v541_v62, 7  ;;  %v534_v17 = vmax.f32 %v482_v10, 0.0  ;;  %v648_v29 = vrot.slane %v541_v62, 1  ;;  %2255 = vst [vmem:[#allocation16_spill] sm:$0xff] %v1797_v56  ;;  %v1800_v10 = vmul.f32 %v1605_v58, %v541_v62 }
  0xcd   : > { %v1804_v41 = vmul.f32 %v1619_v3, %v541_v62  ;;  %2256 = vst [vmem:[#allocation17_spill] sm:$0xff] %v1807_v11 }
  0xce   : > { %v577_v22 = vrot.slane %v534_v17, 7  ;;  %v588_v37 = vsel %vm570_vm0, %v586_v43, %v587_v15  ;;  %v1810_v28 = vmul.f32 %v1605_v58, %v534_v17  ;;  %v1815_v61 = vsel %vm631_vm1, %v648_v29, 0.0 }
  0xcf   : > { %2258 = vst [vmem:[#allocation19_spill] sm:$0xff] %v1815_v61  ;;  %v737_v18 = vmul.f32 %v1627_v5, %v588_v37  ;;  %v638_v13 = vrot.slane %v534_v17, 1  ;;  %v1820_v0 = vsel %vm631_vm1, %v647_v4, %v648_v29  ;;  %v864_v11 = vmul.f32 %v1632_v6, %v534_v17 }
  0xd0   : > { %v623_v33 = vsel %vm570_vm0, 0.0, %v577_v22  ;;  %2259 = vst [vmem:[#allocation20_spill] sm:$0xff] %v1820_v0  ;;  %v1833_v31 = vmul.f32 %v1706_v39, %v1815_v61 }
  0xd1   : > { %v506_v43 = vpop.f32.mrf.mxu2  ;;  %v762_v15 = vmul.f32 %v1645_v12, %v623_v33  ;;  %v730_v40 = vmul.f32 %v1627_v5, %v623_v33  ;;  %v1828_v32 = vmul.f32 %v1600_v57, %v623_v33 }
  0xd2   : > { %v1812_v14 = vmax.f32 %v506_v43, 0.0  ;;  %v1825_v43 = vmul.f32 %v1619_v3, %v534_v17 }
  0xd3   : > { %v485_v25 = vpop.f32.mrf.mxu0  ;;  %v778_v60 = vadd.f32 %v762_v15, %v744_v1  ;;  %v1836_v1 = vmul.f32 %v1600_v57, %v588_v37  ;;  %v1840_v15 = vmul.f32 %v1656_v16, %v1820_v0  ;;  %v746_v33 = vadd.f32 %v730_v40, %v696_v54 }
  0xd4   : > { %2257 = vst [vmem:[#allocation18_spill] sm:$0xff] %v1812_v14  ;;  %v589_v23 = vrot.slane %v1812_v14, 7  ;;  %v535_v2 = vmax.f32 %v485_v25, 0.0  ;;  %v753_v25 = vadd.f32 %v737_v18, %v703_v50  ;;  %v1858_v18 = vmul.f32 %v1645_v12, %v588_v37 }
  0xd5   : > { %v812_v59 = vadd.f32 %v1636_v9, %v778_v60  ;;  %v1845_v9 = vmul.f32 %v1656_v16, %v1815_v61  ;;  %v1849_v60 = vmul.f32 %v1693_v35, %v1820_v0  ;;  %v1865_v40 = vmul.f32 %v1605_v58, %v1812_v14 }
  0xd6   : > { %v578_v4 = vrot.slane %v535_v2, 7  ;;  %v639_v29 = vrot.slane %v535_v2, 1  ;;  %v1852_v63 = vsel %vm570_vm0, 0.0, %v589_v23  ;;  %2262 = vst [vmem:[#allocation23_spill] sm:$0xff] %v1858_v18  ;;  %v650_v61 = vrot.slane %v1812_v14, 1 }
  0xd7   : > { %v846_v17 = vadd.f32 %v1727_v48, %v812_v59  ;;  %2260 = vst [vmem:[#allocation21_spill] sm:$0xff] %v1849_v60  ;;  %v1861_v48 = vmul.f32 %v1632_v6, %v541_v62  ;;  %v1878_v62 = vmul.f32 %v1619_v3, %v1812_v14  ;;  %v1882_v60 = vmul.f32 %v1600_v57, %v1852_v63 }
  0xd8   : > { %2261 = vst [vmem:[#allocation22_spill] sm:$0xff] %v1852_v63  ;;  %v1855_v50 = vsel %vm570_vm0, %v577_v22, %v578_v4  ;;  %v1871_v22 = vmul.f32 %v1605_v58, %v535_v2  ;;  %v640_v37 = vsel %vm631_vm1, %v638_v13, %v639_v29  ;;  %v865_v14 = vmul.f32 %v1632_v6, %v535_v2 }
  0xd9   : > { %2263 = vst [vmem:[#allocation24_spill] sm:$0xff] %v1861_v48  ;;  %v509_v54 = vpop.f32.mrf.mxu2  ;;  %v880_v59 = vadd.f32 %v864_v11, %v846_v17  ;;  %v763_v0 = vmul.f32 %v1645_v12, %v1855_v50  ;;  %v1886_v48 = vsel %vm631_vm1, %v639_v29, 0.0  ;;  %v966_v27 = vmul.f32 %v1693_v35, %v640_v37 }
  0xda   : > { %2264 = vst [vmem:[#allocation25_spill] sm:$0xff] %v1865_v40  ;;  %v1873_v4 = vmax.f32 %v509_v54, 0.0  ;;  %v738_v54 = vmul.f32 %v1627_v5, %v1852_v63  ;;  %v1924_v63 = vmul.f32 %v1656_v16, %v640_v37 }
  0xdb   : > { %2265 = vst [vmem:[#allocation26_spill] sm:$0xff] %v1871_v22  ;;  %v488_v11 = vpop.f32.mrf.mxu0  ;;  %v914_v17 = vadd.f32 %v1688_v34, %v880_v59  ;;  %v779_v18 = vadd.f32 %v763_v0, %v745_v49  ;;  %v967_v49 = vmul.f32 %v1693_v35, %v1886_v48  ;;  %v1904_v59 = vmul.f32 %v1619_v3, %v535_v2 }
  0xdc   : > { %2266 = vst [vmem:[#allocation27_spill] sm:$0xff] %v1886_v48  ;;  %v590_v13 = vrot.slane %v1873_v4, 7  ;;  %v1891_v56 = vmax.f32 %v488_v11, 0.0  ;;  %v651_v34 = vrot.slane %v1873_v4, 1  ;;  %v1918_v2 = vmul.f32 %v1706_v39, %v1886_v48 }
  0xdd   : > { %v948_v45 = vadd.f32 %v932_v42, %v914_v17  ;;  %v813_v52 = vadd.f32 %v1667_v24, %v779_v18  ;;  %v731_v24 = vmul.f32 %v1627_v5, %v1855_v50  ;;  %v1913_v18 = vmul.f32 %v1706_v39, %v640_v37  ;;  %2267 = vst [vmem:[#allocation28_spill] sm:$0xff] %v1924_v63 }
  0xde   : > { %v1898_v29 = vsel %vm570_vm0, %v589_v23, %v590_v13  ;;  %v580_v0 = vrot.slane %v1891_v56, 7  ;;  %v754_v13 = vadd.f32 %v738_v54, %v1768_v19  ;;  %v1928_v22 = vmul.f32 %v1605_v58, %v1873_v4 }
  0xdf   : > { %v982_v11 = vadd.f32 %v966_v27, %v948_v45  ;;  %v847_v42 = vadd.f32 %v1775_v20, %v813_v52  ;;  %v771_v17 = vmul.f32 %v1645_v12, %v1898_v29  ;;  %v1921_v52 = vsel %vm631_vm1, %v651_v34, 0.0 }
  0xe0   : > { %v624_v23 = vsel %vm570_vm0, 0.0, %v580_v0  ;;  %2268 = vst [vmem:[#allocation29_spill] sm:$0xff] %v1928_v22  ;;  %v873_v19 = vmul.f32 %v1632_v6, %v1873_v4  ;;  %v975_v22 = vmul.f32 %v1693_v35, %v1921_v52 }
  0xe1   : > { %v512_v27 = vpop.f32.mrf.mxu2  ;;  %1030 = vmatmul.f32.vlgmr.msra.gmra.mxu1 %v982_v11  ;;  %v881_v45 = vadd.f32 %v865_v14, %v847_v42  ;;  %v787_v20 = vadd.f32 %v771_v17, %v753_v25  ;;  %v764_v54 = vmul.f32 %v1645_v12, %v624_v23  ;;  %v1937_v14 = vmul.f32 %v1605_v58, %v1891_v56 }
  0xe2   : > { %v1930_v53 = vmax.f32 %v512_v27, 0.0  ;;  %v747_v42 = vadd.f32 %v731_v24, %v1778_v21 }
  0xe3   : > { %2269 = vst [vmem:[#allocation30_spill] sm:$0xff] %v1937_v14  ;;  %v491_v11 = vpop.f32.mrf.mxu0  ;;  %v915_v25 = vadd.f32 %v1696_v36, %v881_v45  ;;  %v821_v37 = vadd.f32 %v1701_v38, %v787_v20  ;;  %v780_v48 = vadd.f32 %v764_v54, %v746_v33  ;;  %v641_v14 = vrot.slane %v1891_v56, 1 }
  0xe4   : > { %v592_v17 = vrot.slane %v1930_v53, 7  ;;  %v1943_v27 = vmax.f32 %v491_v11, 0.0  ;;  %v1951_v36 = vsel %vm631_vm1, %v650_v61, %v651_v34  ;;  %v1954_v38 = vmul.f32 %v1600_v57, %v624_v23 }
  0xe5   : > { %v949_v63 = vadd.f32 %v1787_v44, %v915_v25  ;;  %v855_v40 = vadd.f32 %v1804_v41, %v821_v37  ;;  %v866_v33 = vmul.f32 %v1632_v6, %v1891_v56  ;;  %v814_v20 = vadd.f32 %v1723_v47, %v780_v48 }
  0xe6   : > { %v1957_v21 = vsel %vm570_vm0, 0.0, %v592_v17  ;;  %v581_v24 = vrot.slane %v1943_v27, 7  ;;  %v642_v41 = vrot.slane %v1943_v27, 1  ;;  %v732_v61 = vmul.f32 %v1627_v5, %v624_v23 }
  0xe7   : > { %v983_v45 = vadd.f32 %v967_v49, %v949_v63  ;;  %v889_v44 = vadd.f32 %v873_v19, %v855_v40  ;;  %v772_v54 = vmul.f32 %v1645_v12, %v1957_v21  ;;  %v942_v11 = vmul.f32 %v1706_v39, %v1951_v36 }
  0xe8   : > { %v1966_v34 = vsel %vm570_vm0, %v580_v0, %v581_v24  ;;  %v848_v40 = vadd.f32 %v1825_v43, %v814_v20  ;;  %v739_v48 = vmul.f32 %v1627_v5, %v1898_v29  ;;  %v841_v23 = vmul.f32 %v1619_v3, %v1873_v4 }
  0xe9   : > { %v515_v25 = vpop.f32.mrf.mxu2  ;;  %1033 = vmatmul.f32.gmra.mxu1 %v983_v45  ;;  %v923_v63 = vadd.f32 %v1732_v51, %v889_v44  ;;  %v765_v47 = vmul.f32 %v1645_v12, %v1966_v34  ;;  %v788_v49 = vadd.f32 %v772_v54, %v754_v13  ;;  %v1984_v19 = vmul.f32 %v1706_v39, %v1921_v52 }
  0xea   : > { %v1978_v0 = vmax.f32 %v515_v25, 0.0  ;;  %v1988_v43 = vsel %vm631_vm1, %v641_v14, %v642_v41  ;;  %v882_v37 = vadd.f32 %v866_v33, %v848_v40  ;;  %v653_v44 = vrot.slane %v1930_v53, 1 }
  0xeb   : > { %v957_v51 = vadd.f32 %v1833_v31, %v923_v63  ;;  %v781_v24 = vadd.f32 %v765_v47, %v747_v42  ;;  %v822_v13 = vadd.f32 %v1762_v7, %v788_v49  ;;  %v874_v4 = vmul.f32 %v1632_v6, %v1930_v53 }
  0xec   : > { %v593_v45 = vrot.slane %v1978_v0, 7  ;;  %v916_v54 = vadd.f32 %v1790_v46, %v882_v37  ;;  %v654_v25 = vrot.slane %v1978_v0, 1  ;;  %v968_v42 = vmul.f32 %v1693_v35, %v1988_v43 }
  0xed   : > { %v991_v20 = vadd.f32 %v975_v22, %v957_v51  ;;  %v815_v31 = vadd.f32 %v1772_v8, %v781_v24  ;;  %v856_v33 = vadd.f32 %v1878_v62, %v822_v13  ;;  %v755_v7 = vadd.f32 %v739_v48, %v1836_v1 }
  0xee   : > { %v1999_v14 = vsel %vm570_vm0, %v592_v17, %v593_v45  ;;  %v950_v63 = vadd.f32 %v1913_v18, %v916_v54  ;;  %v867_v46 = vmul.f32 %v1632_v6, %v1943_v27  ;;  %v2013_v17 = vmul.f32 %v1605_v58, %v1943_v27 }
  0xef   : > { %1057 = vmatmul.f32.vlgmr.msra.gmra.mxu3 %v991_v20  ;;  %v849_v22 = vadd.f32 %v1904_v59, %v815_v31  ;;  %v773_v8 = vmul.f32 %v1645_v12, %v1999_v14  ;;  %v890_v40 = vadd.f32 %v874_v4, %v856_v33  ;;  %v2016_v62 = vsel %vm631_vm1, %v642_v41, 0.0 }
  0xf0   : > { %v748_v1 = vadd.f32 %v732_v61, %v1828_v32  ;;  %v984_v18 = vadd.f32 %v968_v42, %v950_v63  ;;  %v2020_v59 = vsel %vm631_vm1, %v653_v44, %v654_v25  ;;  %v740_v51 = vmul.f32 %v1627_v5, %v1957_v21 }
  0xf1   : > { %v518_v47 = vpop.f32.mrf.mxu2  ;;  %v883_v48 = vadd.f32 %v867_v46, %v849_v22  ;;  %v789_v49 = vadd.f32 %v773_v8, %v755_v7  ;;  %v924_v24 = vadd.f32 %v1840_v15, %v890_v40  ;;  %v969_v32 = vmul.f32 %v1693_v35, %v2016_v62 }
  0xf2   : > { %v2024_v37 = vmax.f32 %v518_v47, 0.0  ;;  %v782_v45 = vadd.f32 %v1680_v30, %v748_v1  ;;  %1036 = vmatmul.f32.gmra.mxu1 %v984_v18  ;;  %v2032_v61 = vsel %vm631_vm1, %v654_v25, 0.0  ;;  %v976_v4 = vmul.f32 %v1693_v35, %v2020_v59 }
  0xf3   : > { %v917_v41 = vadd.f32 %v1794_v55, %v883_v48  ;;  %v823_v44 = vadd.f32 %v1800_v10, %v789_v49  ;;  %v875_v15 = vmul.f32 %v1632_v6, %v1978_v0  ;;  %v708_v30 = vmul.f32 %v1600_v57, %v1957_v21 }
  0xf4   : > { %v595_v13 = vrot.slane %v2024_v37, 7  ;;  %v958_v55 = vadd.f32 %v942_v11, %v924_v24  ;;  %v816_v25 = vadd.f32 %v1810_v28, %v782_v45  ;;  %v977_v10 = vmul.f32 %v1693_v35, %v2032_v61 }
  0xf5   : > { %v951_v20 = vadd.f32 %v1918_v2, %v917_v41  ;;  %v857_v54 = vadd.f32 %v841_v23, %v823_v44  ;;  %v2049_v42 = vmul.f32 %v1605_v58, %v1930_v53  ;;  %v834_v33 = vmul.f32 %v1619_v3, %v1891_v56  ;;  %v2271_v44 = vld [vmem:[#allocation28_spill] sm:$0xff] }
  0xf6   : > { %v629_v31 = vsel %vm570_vm0, 0.0, %v595_v13  ;;  %v992_v11 = vadd.f32 %v976_v4, %v958_v55  ;;  %v756_v2 = vadd.f32 %v740_v51, %v1882_v60  ;;  %v699_v63 = vmul.f32 %v1600_v57, %v1855_v50  ;;  %v2270_v51 = vld [vmem:[#allocation25_spill] sm:$0xff]  ;;  %v2272_v55 = vld [vmem:[#allocation10_spill] sm:$0xff] }
  0xf7   : > { %v774_v21 = vmul.f32 %v1645_v12, %v629_v31  ;;  %v985_v7 = vadd.f32 %v969_v32, %v951_v20  ;;  %v891_v23 = vadd.f32 %v875_v15, %v857_v54  ;;  %v850_v28 = vadd.f32 %v834_v33, %v816_v25 }
  0xf8   : > { %v733_v22 = vmul.f32 %v1627_v5, %v1966_v34  ;;  %1060 = vmatmul.f32.gmra.mxu3 %v992_v11  ;;  %v936_v8 = vmul.f32 %v1706_v39, %v1988_v43  ;;  %v842_v40 = vmul.f32 %v1619_v3, %v1930_v53  ;;  %v910_v60 = vmul.f32 %v1656_v16, %v1951_v36 }
  0xf9   : > { %v521_v46 = vpop.f32.mrf.mxu2  ;;  %v790_v56 = vadd.f32 %v774_v21, %v756_v2  ;;  %v925_v47 = vadd.f32 %v1845_v9, %v891_v23  ;;  %v884_v50 = vadd.f32 %v1673_v26, %v850_v28  ;;  %v656_v48 = vrot.slane %v2024_v37, 1  ;;  %v2273_v23 = vld [vmem:[#allocation26_spill] sm:$0xff] }
  0xfa   : > { %v2065_v1 = vmax.f32 %v521_v46, 0.0  ;;  %v749_v18 = vadd.f32 %v733_v22, %v699_v63  ;;  %v2072_v49 = vmul.f32 %v1619_v3, %v2024_v37  ;;  %1039 = vmatmul.f32.gmra.mxu1 %v985_v7  ;;  %v741_v53 = vmul.f32 %v1627_v5, %v1999_v14  ;;  %v2274_v63 = vld [vmem:[#allocation9_spill] sm:$0xff] }
  0xfb   : > { %v824_v24 = vadd.f32 %v2270_v51, %v790_v56  ;;  %v742_v45 = vmul.f32 %v1627_v5, %v629_v31  ;;  %v707_v26 = vmul.f32 %v1600_v57, %v1898_v29  ;;  %v959_v32 = vadd.f32 %v1984_v19, %v925_v47  ;;  %v2277_v51 = vld [vmem:[#allocation4_spill] sm:$0xff] }
  0xfc   : > { %v596_v41 = vrot.slane %v2065_v1, 7  ;;  %v657_v9 = vrot.slane %v2065_v1, 1  ;;  %v918_v4 = vadd.f32 %v2271_v44, %v884_v50  ;;  %v783_v20 = vadd.f32 %v2272_v55, %v749_v18  ;;  %v2276_v50 = vld [vmem:[#allocation29_spill] sm:$0xff] }
  0xfd   : > { %v858_v15 = vadd.f32 %v842_v40, %v824_v24  ;;  %v876_v54 = vmul.f32 %v1632_v6, %v2024_v37  ;;  %v944_v31 = vmul.f32 %v1706_v39, %v2020_v59  ;;  %v2092_v33 = vmul.f32 %v1600_v57, %v1999_v14  ;;  %v2275_v14 = vld [vmem:[#allocation27_spill] sm:$0xff] }
  0xfe   : > { %v597_v25 = vsel %vm570_vm0, %v595_v13, %v596_v41  ;;  %v993_v19 = vadd.f32 %v977_v10, %v959_v32  ;;  %v952_v21 = vadd.f32 %v936_v8, %v918_v4  ;;  %v757_v11 = vadd.f32 %v741_v53, %v707_v26  ;;  %v2278_v32 = vld [vmem:[#allocation8_spill] sm:$0xff] }
  0xff   : > { %v775_v29 = vmul.f32 %v1645_v12, %v597_v25  ;;  %v758_v7 = vadd.f32 %v742_v45, %v708_v30  ;;  %v892_v2 = vadd.f32 %v876_v54, %v858_v15  ;;  %v817_v28 = vadd.f32 %v2273_v23, %v783_v20  ;;  %v2279_v15 = vld [vmem:[#allocation16_spill] sm:$0xff]  ;;  %v2281_v23 = vld [vmem:[#allocation13_spill] sm:$0xff] }
 0x100   : > { %v835_v37 = vmul.f32 %v1619_v3, %v1943_v27  ;;  %1063 = vmatmul.f32.gmra.mxu3 %v993_v19  ;;  %v986_v22 = vadd.f32 %v2274_v63, %v952_v21  ;;  %v2100_v46 = vsel %vm631_vm1, %v656_v48, %v657_v9  ;;  %v903_v56 = vmul.f32 %v1656_v16, %v2275_v14  ;;  %v2280_v21 = vld [vmem:[#allocation30_spill] sm:$0xff] }
 0x101   : > { %v524_v13 = vpop.f32.mrf.mxu2  ;;  %v791_v10 = vadd.f32 %v775_v29, %v757_v11  ;;  %v926_v40 = vadd.f32 %v910_v60, %v892_v2  ;;  %v937_v47 = vmul.f32 %v1706_v39, %v2016_v62  ;;  %v877_v27 = vmul.f32 %v1632_v6, %v2065_v1 }
 0x102   : > { %v548_v8 = vmax.f32 %v524_v13, 0.0  ;;  %v851_v30 = vadd.f32 %v835_v37, %v817_v28  ;;  %1042 = vmatmul.f32.gmra.mxu1 %v986_v22  ;;  %v843_v48 = vmul.f32 %v1619_v3, %v1978_v0  ;;  %v750_v24 = vadd.f32 %v2277_v51, %v1954_v38  ;;  %v2282_v13 = vld [vmem:[#allocation5_spill] sm:$0xff] }
 0x103   : > { %v825_v18 = vadd.f32 %v2276_v50, %v791_v10  ;;  %v960_v45 = vadd.f32 %v944_v31, %v926_v40  ;;  %v978_v60 = vmul.f32 %v1693_v35, %v2100_v46  ;;  %v2116_v41 = vsel %vm631_vm1, %v657_v9, 0.0  ;;  %v2284_v40 = vld [vmem:[#allocation22_spill] sm:$0xff]  ;;  %v2285_v50 = vld [vmem:[#allocation11_spill] sm:$0xff] }
 0x104   : > { %v598_v53 = vrot.slane %v548_v8, 7  ;;  %v743_v26 = vmul.f32 %v1627_v5, %v597_v25  ;;  %v885_v44 = vadd.f32 %v2278_v32, %v851_v30  ;;  %v784_v55 = vadd.f32 %v2279_v15, %v750_v24 }
 0x105   : > { %v859_v4 = vadd.f32 %v843_v48, %v825_v18  ;;  %v994_v54 = vadd.f32 %v978_v60, %v960_v45  ;;  %v911_v38 = vmul.f32 %v1656_v16, %v1921_v52  ;;  %v701_v31 = vmul.f32 %v1600_v57, %v1966_v34  ;;  %v2286_v48 = vld [vmem:[#allocation15_spill] sm:$0xff] }
 0x106   : > { %v630_v20 = vsel %vm570_vm0, 0.0, %v598_v53  ;;  %v919_v9 = vadd.f32 %v903_v56, %v885_v44  ;;  %v818_v5 = vadd.f32 %v2280_v21, %v784_v55  ;;  %v945_v25 = vmul.f32 %v1706_v39, %v2032_v61  ;;  %v2283_v56 = vld [vmem:[#allocation23_spill] sm:$0xff] }
 0x107   : > { %v776_v29 = vmul.f32 %v1645_v12, %v630_v20  ;;  %v893_v19 = vadd.f32 %v877_v27, %v859_v4  ;;  %v979_v11 = vmul.f32 %v1693_v35, %v2116_v41  ;;  %v904_v2 = vmul.f32 %v1656_v16, %v1988_v43  ;;  %v2287_v4 = vld [vmem:[#allocation17_spill] sm:$0xff] }
 0x108   : > { %v751_v52 = vadd.f32 %v2281_v23, %v701_v31  ;;  %1066 = vmatmul.f32.gmra.mxu3 %v994_v54  ;;  %v953_v34 = vadd.f32 %v937_v47, %v919_v9  ;;  %v852_v63 = vadd.f32 %v2282_v13, %v818_v5  ;;  %v659_v22 = vrot.slane %v548_v8, 1  ;;  %v2288_v54 = vld [vmem:[#allocation14_spill] sm:$0xff] }
 0x109   : > { %v792_v28 = vadd.f32 %v776_v29, %v758_v7  ;;  %v527_v57 = vpop.f32.mrf.mxu2  ;;  %v927_v37 = vadd.f32 %v911_v38, %v893_v19  ;;  %v770_v30 = vmul.f32 %v1645_v12, %v2284_v40  ;;  %v878_v51 = vmul.f32 %v1632_v6, %v548_v8  ;;  %v2290_v19 = vld [vmem:[#allocation24_spill] sm:$0xff]  ;;  %v2293_v23 = vld [vmem:[#allocation18_spill] sm:$0xff] }
 0x10a   : > { %v549_v14 = vmax.f32 %v527_v57, 0.0  ;;  %v785_v10 = vadd.f32 %v2283_v56, %v751_v52  ;;  %v987_v43 = vadd.f32 %v2285_v50, %v953_v34  ;;  %v886_v7 = vadd.f32 %v2286_v48, %v852_v63  ;;  %v2294_v57 = vld [vmem:[#allocation21_spill] sm:$0xff]  ;;  %v2295_v56 = vld [vmem:[#allocation6_spill] sm:$0xff] }
 0x10b   : > { %v826_v27 = vadd.f32 %v2049_v42, %v792_v28  ;;  %v961_v18 = vadd.f32 %v945_v25, %v927_v37  ;;  %v786_v15 = vadd.f32 %v770_v30, %v2287_v4  ;;  %v759_v55 = vadd.f32 %v743_v26, %v2092_v33  ;;  %v2292_v33 = vld [vmem:[#allocation3_spill] sm:$0xff] }
 0x10c   : > { %v599_v47 = vrot.slane %v549_v14, 7  ;;  %v660_v24 = vrot.slane %v549_v14, 1  ;;  %v819_v45 = vadd.f32 %v2013_v17, %v785_v10  ;;  %1045 = vmatmul.f32.gmra.mxu1 %v987_v43  ;;  %v920_v44 = vadd.f32 %v904_v2, %v886_v7  ;;  %v2289_v17 = vld [vmem:[#allocation12_spill] sm:$0xff] }
 0x10d   : > { %v860_v60 = vadd.f32 %v2072_v49, %v826_v27  ;;  %v995_v32 = vadd.f32 %v979_v11, %v961_v18  ;;  %v912_v20 = vmul.f32 %v1656_v16, %v2020_v59  ;;  %v811_v9 = vmul.f32 %v1605_v58, %v1978_v0  ;;  %v2296_v27 = vld [vmem:[#allocation19_spill] sm:$0xff] }
 0x10e   : > { %v600_v42 = vsel %vm570_vm0, %v598_v53, %v599_v47  ;;  %v853_v8 = vadd.f32 %v2288_v54, %v819_v45  ;;  %v954_v29 = vadd.f32 %v2289_v17, %v920_v44  ;;  %v661_v49 = vsel %vm631_vm1, %v659_v22, %v660_v24  ;;  %v2291_v53 = vld [vmem:[#allocation2_spill] sm:$0xff] }
 0x10f   : > { %v894_v38 = vadd.f32 %v878_v51, %v860_v60  ;;  %v777_v31 = vmul.f32 %v1645_v12, %v600_v42  ;;  %v820_v5 = vadd.f32 %v2291_v53, %v786_v15  ;;  %v838_v26 = vmul.f32 %v1619_v3, %v2292_v33 }
 0x110   : > { %v887_v21 = vadd.f32 %v2290_v19, %v853_v8  ;;  %1069 = vmatmul.f32.gmra.mxu3 %v995_v32  ;;  %v946_v12 = vmul.f32 %v1706_v39, %v2100_v46  ;;  %v905_v11 = vmul.f32 %v1656_v16, %v2016_v62  ;;  %v845_v2 = vmul.f32 %v1619_v3, %v2065_v1 }
 0x111   : > { %v793_v59 = vadd.f32 %v777_v31, %v759_v55  ;;  %v928_v25 = vadd.f32 %v912_v20, %v894_v38  ;;  %v980_v58 = vmul.f32 %v1693_v35, %v661_v49  ;;  %v854_v0 = vadd.f32 %v838_v26, %v820_v5 }
 0x112   : > { %v872_v52 = vmul.f32 %v1632_v6, %v2293_v23  ;;  %v988_v34 = vadd.f32 %v2294_v57, %v954_v29  ;;  %v921_v13 = vadd.f32 %v905_v11, %v887_v21  ;;  %v879_v46 = vmul.f32 %v1632_v6, %v549_v14  ;;  %v2297_v14 = vld [vmem:[#allocation7_spill] sm:$0xff] }
 0x113   : > { %v827_v28 = vadd.f32 %v811_v9, %v793_v59  ;;  %v962_v37 = vadd.f32 %v946_v12, %v928_v25  ;;  %v939_v3 = vmul.f32 %v1706_v39, %v2295_v56  ;;  %v913_v40 = vmul.f32 %v1656_v16, %v2032_v61 }
 0x114   : > { %v888_v63 = vadd.f32 %v872_v52, %v854_v0  ;;  %1048 = vmatmul.f32.gmra.mxu1 %v988_v34  ;;  %v691_v30 = vsel %vm631_vm1, %v660_v24, 0.0  ;;  %v973_v50 = vmul.f32 %v1693_v35, %v2296_v27  ;;  %v947_v6 = vmul.f32 %v1706_v39, %v2116_v41  ;;  %v2298_v24 = vld [vmem:[#allocation20_spill] sm:$0xff] }
 0x115   : > { %v861_v22 = vadd.f32 %v845_v2, %v827_v28  ;;  %v996_v62 = vadd.f32 %v980_v58, %v962_v37  ;;  %v955_v10 = vadd.f32 %v939_v3, %v921_v13  ;;  %v906_v18 = vmul.f32 %v1656_v16, %v2297_v14 }
 0x116   : > { %v981_v61 = vmul.f32 %v1693_v35, %v691_v30  ;;  %v940_v45 = vmul.f32 %v1706_v39, %v2298_v24  ;;  %v974_v32 = vmul.f32 %v1693_v35, %v1951_v36 }
 0x117   : > { %v895_v1 = vadd.f32 %v879_v46, %v861_v22  ;;  %v989_v48 = vadd.f32 %v973_v50, %v955_v10  ;;  %v922_v51 = vadd.f32 %v906_v18, %v888_v63 }
 0x118   : > { %1072 = vmatmul.f32.gmra.mxu3 %v996_v62 }
 0x119   : > { %v929_v43 = vadd.f32 %v913_v40, %v895_v1  ;;  %v956_v60 = vadd.f32 %v940_v45, %v922_v51 }
 0x11b   : > { %v963_v7 = vadd.f32 %v947_v6, %v929_v43  ;;  %v990_v41 = vadd.f32 %v974_v32, %v956_v60 }
 0x11c   : > { %1051 = vmatmul.f32.gmra.mxu1 %v989_v48 }
 0x11d   : > { %v997_v47 = vadd.f32 %v981_v61, %v963_v7 }
 0x120   : > { %1075 = vmatmul.f32.gmra.mxu3 %v997_v47 }
 0x124   : > { %1054 = vmatmul.f32.gmra.mxu1 %v990_v41 }
 0x15e   : > { %v1031_v16 = vpop.f32.mrf.mxu1 }
 0x15f   : > { %v1079_v35 = vmax.f32 %v1031_v16, 0.0 }
 0x161   : > { %1095 = vst [vmem:[%s2193_s13] sm:$0xff] %v1079_v35 }
 0x166   : > { %v1034_v39 = vpop.f32.mrf.mxu1 }
 0x167   : > { %v1080_v36 = vmax.f32 %v1034_v39, 0.0 }
 0x169   : > { %1096 = vst [vmem:[%s2193_s13 + $0x8] sm:$0xff] %v1080_v36 }
 0x16f   : > { %v1037_v44 = vpop.f32.mrf.mxu1 }
 0x170   : > { %v1081_v4 = vmax.f32 %v1037_v44, 0.0 }
 0x172   : > { %v1058_v15 = vpop.f32.mrf.mxu3  ;;  %1097 = vst [vmem:[%s2193_s13 + $0x10] sm:$0xff] %v1081_v4 }
 0x173   : > { %v1088_v42 = vmax.f32 %v1058_v15, 0.0 }
 0x175   : > { %1104 = vst [vmem:[%s2193_s13 + $0x48] sm:$0xff] %v1088_v42 }
 0x177   : > { %v1040_v55 = vpop.f32.mrf.mxu1 }
 0x178   : > { %v1082_v20 = vmax.f32 %v1040_v55, 0.0 }
 0x17a   : > { %1098 = vst [vmem:[%s2193_s13 + $0x18] sm:$0xff] %v1082_v20 }
 0x17b   : > { %v1061_v54 = vpop.f32.mrf.mxu3 }
 0x17c   : > { %v1089_v8 = vmax.f32 %v1061_v54, 0.0 }
 0x17e   : > { %1105 = vst [vmem:[%s2193_s13 + $0x50] sm:$0xff] %v1089_v8 }
 0x17f   : > { %v1043_v38 = vpop.f32.mrf.mxu1 }
 0x180   : > { %v1083_v31 = vmax.f32 %v1043_v38, 0.0 }
 0x182   : > { %1099 = vst [vmem:[%s2193_s13 + $0x20] sm:$0xff] %v1083_v31 }
 0x183   : > { %v1064_v17 = vpop.f32.mrf.mxu3 }
 0x184   : > { %v1090_v29 = vmax.f32 %v1064_v17, 0.0 }
 0x186   : > { %1106 = vst [vmem:[%s2193_s13 + $0x58] sm:$0xff] %v1090_v29 }
 0x189   : > { %v1046_v49 = vpop.f32.mrf.mxu1 }
 0x18a   : > { %v1084_v9 = vmax.f32 %v1046_v49, 0.0 }
 0x18b   : > { %v1067_v19 = vpop.f32.mrf.mxu3 }
 0x18c   : > { %1100 = vst [vmem:[%s2193_s13 + $0x28] sm:$0xff] %v1084_v9  ;;  %v1091_v21 = vmax.f32 %v1067_v19, 0.0 }
 0x18e   : > { %1107 = vst [vmem:[%s2193_s13 + $0x60] sm:$0xff] %v1091_v21 }
 0x191   : > { %v1049_v53 = vpop.f32.mrf.mxu1 }
 0x192   : > { %v1085_v5 = vmax.f32 %v1049_v53, 0.0 }
 0x193   : > { %v1070_v33 = vpop.f32.mrf.mxu3 }
 0x194   : > { %1101 = vst [vmem:[%s2193_s13 + $0x30] sm:$0xff] %v1085_v5  ;;  %v1092_v26 = vmax.f32 %v1070_v33, 0.0 }
 0x196   : > { %1108 = vst [vmem:[%s2193_s13 + $0x68] sm:$0xff] %v1092_v26 }
 0x199   : > { %v1052_v59 = vpop.f32.mrf.mxu1 }
 0x19a   : > { %v1086_v25 = vmax.f32 %v1052_v59, 0.0 }
 0x19b   : > { %v1073_v12 = vpop.f32.mrf.mxu3 }
 0x19c   : > { %1102 = vst [vmem:[%s2193_s13 + $0x38] sm:$0xff] %v1086_v25  ;;  %v1093_v11 = vmax.f32 %v1073_v12, 0.0 }
 0x19e   : > { %1109 = vst [vmem:[%s2193_s13 + $0x70] sm:$0xff] %v1093_v11 }
 0x1a1   : > { %v1055_v2 = vpop.f32.mrf.mxu1 }
 0x1a2   : > { %v1087_v58 = vmax.f32 %v1055_v2, 0.0 }
 0x1a3   : > { %v1076_v0 = vpop.f32.mrf.mxu3 }
 0x1a4   : > { %1103 = vst [vmem:[%s2193_s13 + $0x40] sm:$0xff] %v1087_v58  ;;  %v1094_v23 = vmax.f32 %v1076_v0, 0.0 }
 0x1a6   : > { %1110 = vst [vmem:[%s2193_s13 + $0x78] sm:$0xff] %v1094_v23 }
 0x1a7 PF: > { %s16_s25 = sadd.s32 1, %s1396_s25   ;;  %s2299_s21 = smov %s1388_s23 }
 0x1a8   : > { %p13_p10 = scmp.ge.s32.totalorder %s16_s25, 6   ;;  %s2300_s22 = smov %s1392_s24 }
 0x1a9   : > { %s2301_s23 = smov %s2304_s26  ;;  %s2302_s24 = smov %s2308_s27 }
 0x1aa   :  { %15 = sbr.rel (!%p13_p10) target bundleno = 3 (0x3), region = 80 }

</bundles_post_ra>
